<compile_context>
chip_gen: v5e
topology: v5e:2x2
jax: 0.10.0
libtpu: 0.0.40
codegen_flags: <defaults>
</compile_context>

<pallas_src>
import jax
import jax.numpy as jnp
from jax.experimental import pallas as pl
from jax.experimental.pallas import tpu as pltpu


def _round_up(x, m):
    return ((x + m - 1) // m) * m


def binary_layer_kernel(x_ref, w1_ref, b1_ref, w2_ref, b2_ref,
                        web_ref, beb_ref, wbe_ref, bbe_ref,
                        w3_ref, b3_ref, w4_ref, b4_ref, o_ref):
    f32 = jnp.float32

    def mm(a, w_ref):
        # bf16 inputs on the MXU, f32 accumulation.
        return jnp.dot(a.astype(w_ref.dtype), w_ref[...],
                       preferred_element_type=f32)

    x = x_ref[...]                      # bf16 activations streamed from HBM
    # ff1 + residual + relu  (bf16 x promotes exactly into the f32 add)
    h = jnp.maximum(mm(x, w1_ref) + b1_ref[...] + x.astype(f32), 0.0)
    # ff2 + residual + relu
    h = jnp.maximum(mm(h, w2_ref) + b2_ref[...] + h, 0.0)
    # eb -> sigmoid -> round.  round(sigmoid(z)) == (sigmoid(z) > 0.5) == (z > 0):
    # sigmoid(0) = 0.5 rounds to 0 under round-half-even, so the strict sign
    # test matches torch.round(torch.sigmoid(z)) except for the measure-zero
    # band 0 < z < ~6e-8 where f32 sigmoid rounds to exactly 0.5.
    # TODO(synk): PassthroughRound's straight-through backward is training-only
    # and is not part of this forward kernel.
    z = mm(h, web_ref) + beb_ref[...]
    binary = jnp.where(z > 0.0, 1.0, 0.0).astype(f32)
    # be -> relu (no residual: dims differ in general)
    y = jnp.maximum(mm(binary, wbe_ref) + bbe_ref[...], 0.0)
    # ff3 + residual + relu
    y = jnp.maximum(mm(y, w3_ref) + b3_ref[...] + y, 0.0)
    # ff4
    o_ref[...] = (mm(y, w4_ref) + b4_ref[...]).astype(o_ref.dtype)


def prepare_params(params, mid, binary_size, compute_dtype=jnp.bfloat16):
    """One-time weight prep (do this OUTSIDE the per-step path): transpose to
    [in, out], zero-pad feature dims up to multiples of 128 (lane-dense), and
    cast weights to the MXU compute dtype. Biases stay f32, shaped [1, dim].
    TODO(synk): on v7x an fp8 compute_dtype would halve resident weight VMEM
    again; gate that behind an accuracy check before enabling."""
    dp = _round_up(mid, 128)
    bp = _round_up(binary_size, 128)

    def w(name, d_in, d_out, p_in, p_out):
        wt = jnp.asarray(params[name], jnp.float32).T          # [in, out]
        wt = jnp.pad(wt, ((0, p_in - d_in), (0, p_out - d_out)))
        return wt.astype(compute_dtype)

    def b(name, d, p):
        bb = jnp.asarray(params[name], jnp.float32)
        return jnp.pad(bb, (0, p - d)).reshape(1, p)

    prep = {
        "w1": w("w1", mid, mid, dp, dp),               "b1": b("b1", mid, dp),
        "w2": w("w2", mid, mid, dp, dp),               "b2": b("b2", mid, dp),
        "web": w("web", mid, binary_size, dp, bp),     "beb": b("beb", binary_size, bp),
        "wbe": w("wbe", binary_size, mid, bp, dp),     "bbe": b("bbe", mid, dp),
        "w3": w("w3", mid, mid, dp, dp),               "b3": b("b3", mid, dp),
        "w4": w("w4", mid, mid, dp, dp),               "b4": b("b4", mid, dp),
    }
    return prep, dp, bp


def _const_spec(shape, index_map):
    """Constant-index (weight/bias) BlockSpec, single-buffered when supported."""
    if hasattr(pl, "Buffered"):
        try:
            return pl.BlockSpec(shape, index_map, pipeline_mode=pl.Buffered(1))
        except TypeError:
            pass
    return pl.BlockSpec(shape, index_map)


def _vmem_capacity_bytes():
    try:
        return int(pltpu.get_tpu_info().vmem_capacity_bytes)
    except Exception:
        return 64 * 1024 * 1024          # conservative (v7x per-TC VMEM)


def binary_layer(x, prep, *, dim, dim_padded, bin_padded, row_tile=512,
                 act_dtype=jnp.bfloat16):
    """x: [batch, seq, dim] f32; prep: output of prepare_params."""
    B, S, D = x.shape
    assert D == dim
    rows = B * S
    dp, bp = dim_padded, bin_padded

    # Row tile: forced multiple of 16 (bf16 sublane quantum); default 512 for
    # HBM-roofline utilization and grid-overhead amortization; capped at the
    # (padded) row count for tiny inputs.
    TM = _round_up(min(row_tile, rows), 16)
    rows_p = _round_up(rows, TM)

    # Activations streamed in bf16 (halves x HBM traffic); output stays f32.
    x2d = jnp.pad(x.reshape(rows, D),
                  ((0, rows_p - rows), (0, dp - D))).astype(act_dtype)

    const = lambda i: (0, 0)
    row_blk = lambda i: (i, 0)

    w_itemsize = jnp.dtype(prep["w1"].dtype).itemsize
    w_bytes = (4 * dp * dp + 2 * dp * bp) * w_itemsize          # single-buffered
    b_bytes = (4 * dp + 2 * bp) * 4
    io_bytes = 2 * TM * dp * jnp.dtype(act_dtype).itemsize * 2  # x double-buffered
    io_bytes += 2 * TM * dp * 4                                  # out double-buffered
    live_bytes = 8 * TM * max(dp, bp) * 4                        # f32 intermediates
    vmem_needed = w_bytes + b_bytes + io_bytes + live_bytes + (16 << 20)
    vmem_limit = min(max(vmem_needed, 32 << 20),
                     int(0.9 * _vmem_capacity_bytes()))

    cost = pl.CostEstimate(
        flops=int(2 * rows_p * (4 * dp * dp + 2 * dp * bp)),
        transcendentals=0,                                       # sign-test gate
        bytes_accessed=int(rows_p * dp * (jnp.dtype(act_dtype).itemsize + 4)
                           + w_bytes + b_bytes),
    )

    out2d = pl.pallas_call(
        binary_layer_kernel,
        out_shape=jax.ShapeDtypeStruct((rows_p, dp), jnp.float32),
        grid_spec=pltpu.PrefetchScalarGridSpec(
            num_scalar_prefetch=0,
            grid=(rows_p // TM,),
            in_specs=[
                pl.BlockSpec((TM, dp), row_blk),    # x tile (bf16)
                _const_spec((dp, dp), const),       # ff1 weight^T (bf16)
                _const_spec((1, dp), const),        # ff1 bias (f32)
                _const_spec((dp, dp), const),       # ff2 weight^T
                _const_spec((1, dp), const),        # ff2 bias
                _const_spec((dp, bp), const),       # eb weight^T
                _const_spec((1, bp), const),        # eb bias
                _const_spec((bp, dp), const),       # be weight^T
                _const_spec((1, dp), const),        # be bias
                _const_spec((dp, dp), const),       # ff3 weight^T
                _const_spec((1, dp), const),        # ff3 bias
                _const_spec((dp, dp), const),       # ff4 weight^T
                _const_spec((1, dp), const),        # ff4 bias
            ],
            out_specs=pl.BlockSpec((TM, dp), row_blk),
        ),
        compiler_params=pltpu.CompilerParams(
            dimension_semantics=("parallel",),      # megacore sharding on v7x
            vmem_limit_bytes=int(vmem_limit)),
        cost_estimate=cost,
    )(x2d, prep["w1"], prep["b1"], prep["w2"], prep["b2"],
      prep["web"], prep["beb"], prep["wbe"], prep["bbe"],
      prep["w3"], prep["b3"], prep["w4"], prep["b4"])

    return out2d[:rows, :D].reshape(B, S, D)


def init_params(key, mid, binary_size):
    """PyTorch nn.Linear default init: U(-1/sqrt(in), 1/sqrt(in))."""
    ks = jax.random.split(key, 12)

    def lin(kw, kb, d_in, d_out):
        bound = 1.0 / (d_in ** 0.5)
        w = jax.random.uniform(kw, (d_out, d_in), jnp.float32, -bound, bound)
        b = jax.random.uniform(kb, (d_out,), jnp.float32, -bound, bound)
        return w, b

    p = {}
    p["w1"], p["b1"] = lin(ks[0], ks[1], mid, mid)
    p["w2"], p["b2"] = lin(ks[2], ks[3], mid, mid)
    p["web"], p["beb"] = lin(ks[4], ks[5], mid, binary_size)
    p["wbe"], p["bbe"] = lin(ks[6], ks[7], binary_size, mid)
    p["w3"], p["b3"] = lin(ks[8], ks[9], mid, mid)
    p["w4"], p["b4"] = lin(ks[10], ks[11], mid, mid)
    return p


def reference(x, p, compute_dtype=jnp.bfloat16):
    """Pure-JAX reference of BinaryLayer.forward using the same precision
    convention as the kernel: bf16-streamed activations, bf16 matmul inputs,
    f32 accumulation (PyTorch-layout weights)."""
    x = x.astype(compute_dtype).astype(jnp.float32)   # mirror bf16 activation I/O

    def lin(v, w, b):
        return jnp.dot(v.astype(compute_dtype), w.T.astype(compute_dtype),
                       preferred_element_type=jnp.float32) + b

    h = jax.nn.relu(lin(x, p["w1"], p["b1"]) + x)
    h = jax.nn.relu(lin(h, p["w2"], p["b2"]) + h)
    sig = jax.nn.sigmoid(lin(h, p["web"], p["beb"]))
    binary = jnp.where(sig > 0.5, 1.0, 0.0)           # == torch.round(sigmoid)
    y = jax.nn.relu(lin(binary, p["wbe"], p["bbe"]))
    y = jax.nn.relu(lin(y, p["w3"], p["b3"]) + y)
    return lin(y, p["w4"], p["b4"])


if __name__ == "__main__":
    key = jax.random.PRNGKey(0)
    k_x, k_p = jax.random.split(key)

    batch, seq = 2, 16
    mid_embedding_size, binary_size = 32, 16

    x = jax.random.normal(k_x, (batch, seq, mid_embedding_size), jnp.float32)
    params = init_params(k_p, mid_embedding_size, binary_size)

    # One-time weight prep (transpose / pad to lane-dense 128 / cast to bf16).
    prep, dp, bp = prepare_params(params, mid_embedding_size, binary_size)

    # row_tile=16 only so this tiny test exercises a multi-step grid
    # (rows=32 -> 2 row tiles); production default is 512.
    out = binary_layer(x, prep, dim=mid_embedding_size,
                       dim_padded=dp, bin_padded=bp, row_tile=16)
    out = jax.block_until_ready(out)

    ref = reference(x, params)
    assert out.shape == (batch, seq, mid_embedding_size)
    assert bool(jnp.all(jnp.isfinite(out)))
    # bf16 matmul inputs / bf16 activation streaming in both kernel and
    # reference -> relaxed tolerance.
    assert jnp.allclose(out, ref, atol=2e-2, rtol=2e-2), (
        "mismatch vs reference: max abs diff = "
        f"{float(jnp.max(jnp.abs(out - ref)))}")

    print("KERNEL_OK")
</pallas_src>

<mosaic_0001>
module attributes {stable_mosaic.version = 11 : i64} {
  func.func @binary_layer_kernel(%arg0: i32, %arg1: memref<16x128xbf16, #tpu.memory_space<vmem>>, %arg2: memref<128x128xbf16, #tpu.memory_space<vmem>>, %arg3: memref<1x128xf32, #tpu.memory_space<vmem>>, %arg4: memref<128x128xbf16, #tpu.memory_space<vmem>>, %arg5: memref<1x128xf32, #tpu.memory_space<vmem>>, %arg6: memref<128x128xbf16, #tpu.memory_space<vmem>>, %arg7: memref<1x128xf32, #tpu.memory_space<vmem>>, %arg8: memref<128x128xbf16, #tpu.memory_space<vmem>>, %arg9: memref<1x128xf32, #tpu.memory_space<vmem>>, %arg10: memref<128x128xbf16, #tpu.memory_space<vmem>>, %arg11: memref<1x128xf32, #tpu.memory_space<vmem>>, %arg12: memref<128x128xbf16, #tpu.memory_space<vmem>>, %arg13: memref<1x128xf32, #tpu.memory_space<vmem>>, %arg14: memref<16x128xf32, #tpu.memory_space<vmem>>) attributes {dimension_semantics = [#tpu.dimension_semantics<parallel>], iteration_bounds = array<i64: 2>, scalar_prefetch = 0 : i64, scratch_operands = 0 : i64, tpu.core_type = #tpu.core_type<tc>, window_params = [{transform_indices = @transform_0, window_bounds = array<i64: 16, 128>}, {pipeline_mode = #tpu.pipeline_mode<synchronous>, transform_indices = @transform_1, window_bounds = array<i64: 128, 128>}, {pipeline_mode = #tpu.pipeline_mode<synchronous>, transform_indices = @transform_2, window_bounds = array<i64: 1, 128>}, {pipeline_mode = #tpu.pipeline_mode<synchronous>, transform_indices = @transform_3, window_bounds = array<i64: 128, 128>}, {pipeline_mode = #tpu.pipeline_mode<synchronous>, transform_indices = @transform_4, window_bounds = array<i64: 1, 128>}, {pipeline_mode = #tpu.pipeline_mode<synchronous>, transform_indices = @transform_5, window_bounds = array<i64: 128, 128>}, {pipeline_mode = #tpu.pipeline_mode<synchronous>, transform_indices = @transform_6, window_bounds = array<i64: 1, 128>}, {pipeline_mode = #tpu.pipeline_mode<synchronous>, transform_indices = @transform_7, window_bounds = array<i64: 128, 128>}, {pipeline_mode = #tpu.pipeline_mode<synchronous>, transform_indices = @transform_8, window_bounds = array<i64: 1, 128>}, {pipeline_mode = #tpu.pipeline_mode<synchronous>, transform_indices = @transform_9, window_bounds = array<i64: 128, 128>}, {pipeline_mode = #tpu.pipeline_mode<synchronous>, transform_indices = @transform_10, window_bounds = array<i64: 1, 128>}, {pipeline_mode = #tpu.pipeline_mode<synchronous>, transform_indices = @transform_11, window_bounds = array<i64: 128, 128>}, {pipeline_mode = #tpu.pipeline_mode<synchronous>, transform_indices = @transform_12, window_bounds = array<i64: 1, 128>}, {transform_indices = @transform_13, window_bounds = array<i64: 16, 128>}]} {
    %c0 = arith.constant 0 : index
    %c0_0 = arith.constant 0 : index
    %0 = vector.load %arg1[%c0, %c0_0] : memref<16x128xbf16, #tpu.memory_space<vmem>>, vector<16x128xbf16>
    %c0_1 = arith.constant 0 : index
    %c0_2 = arith.constant 0 : index
    %1 = vector.load %arg2[%c0_1, %c0_2] : memref<128x128xbf16, #tpu.memory_space<vmem>>, vector<128x128xbf16>
    %cst = arith.constant dense<0.000000e+00> : vector<16x128xf32>
    %2 = tpu.matmul %0, %1, %cst {dimension_numbers = #tpu.dot_dimension_numbers<[1], [0], [0], [1], [0, 0, 1, 1], [], []>} : vector<16x128xbf16>, vector<128x128xbf16>, vector<16x128xf32> -> vector<16x128xf32>
    %c0_3 = arith.constant 0 : index
    %c0_4 = arith.constant 0 : index
    %3 = vector.load %arg3[%c0_3, %c0_4] : memref<1x128xf32, #tpu.memory_space<vmem>>, vector<1x128xf32>
    %4 = vector.broadcast %3 : vector<1x128xf32> to vector<16x128xf32>
    %5 = arith.addf %2, %4 : vector<16x128xf32>
    %6 = arith.extf %0 : vector<16x128xbf16> to vector<16x128xf32>
    %7 = arith.addf %5, %6 : vector<16x128xf32>
    %cst_5 = arith.constant 0.000000e+00 : f32
    %8 = vector.broadcast %cst_5 : f32 to vector<16x128xf32>
    %9 = arith.maximumf %7, %8 : vector<16x128xf32>
    %10 = arith.truncf %9 : vector<16x128xf32> to vector<16x128xbf16>
    %c0_6 = arith.constant 0 : index
    %c0_7 = arith.constant 0 : index
    %11 = vector.load %arg4[%c0_6, %c0_7] : memref<128x128xbf16, #tpu.memory_space<vmem>>, vector<128x128xbf16>
    %cst_8 = arith.constant dense<0.000000e+00> : vector<16x128xf32>
    %12 = tpu.matmul %10, %11, %cst_8 {dimension_numbers = #tpu.dot_dimension_numbers<[1], [0], [0], [1], [0, 0, 1, 1], [], []>} : vector<16x128xbf16>, vector<128x128xbf16>, vector<16x128xf32> -> vector<16x128xf32>
    %c0_9 = arith.constant 0 : index
    %c0_10 = arith.constant 0 : index
    %13 = vector.load %arg5[%c0_9, %c0_10] : memref<1x128xf32, #tpu.memory_space<vmem>>, vector<1x128xf32>
    %14 = vector.broadcast %13 : vector<1x128xf32> to vector<16x128xf32>
    %15 = arith.addf %12, %14 : vector<16x128xf32>
    %16 = arith.addf %15, %9 : vector<16x128xf32>
    %cst_11 = arith.constant 0.000000e+00 : f32
    %17 = vector.broadcast %cst_11 : f32 to vector<16x128xf32>
    %18 = arith.maximumf %16, %17 : vector<16x128xf32>
    %19 = arith.truncf %18 : vector<16x128xf32> to vector<16x128xbf16>
    %c0_12 = arith.constant 0 : index
    %c0_13 = arith.constant 0 : index
    %20 = vector.load %arg6[%c0_12, %c0_13] : memref<128x128xbf16, #tpu.memory_space<vmem>>, vector<128x128xbf16>
    %cst_14 = arith.constant dense<0.000000e+00> : vector<16x128xf32>
    %21 = tpu.matmul %19, %20, %cst_14 {dimension_numbers = #tpu.dot_dimension_numbers<[1], [0], [0], [1], [0, 0, 1, 1], [], []>} : vector<16x128xbf16>, vector<128x128xbf16>, vector<16x128xf32> -> vector<16x128xf32>
    %c0_15 = arith.constant 0 : index
    %c0_16 = arith.constant 0 : index
    %22 = vector.load %arg7[%c0_15, %c0_16] : memref<1x128xf32, #tpu.memory_space<vmem>>, vector<1x128xf32>
    %23 = vector.broadcast %22 : vector<1x128xf32> to vector<16x128xf32>
    %24 = arith.addf %21, %23 : vector<16x128xf32>
    %cst_17 = arith.constant 0.000000e+00 : f32
    %25 = vector.broadcast %cst_17 : f32 to vector<16x128xf32>
    %26 = arith.cmpf ogt, %24, %25 : vector<16x128xf32>
    %cst_18 = arith.constant 1.000000e+00 : f32
    %cst_19 = arith.constant 0.000000e+00 : f32
    %27 = vector.broadcast %cst_18 : f32 to vector<16x128xf32>
    %28 = vector.broadcast %cst_19 : f32 to vector<16x128xf32>
    %29 = arith.select %26, %27, %28 : vector<16x128xi1>, vector<16x128xf32>
    %30 = arith.truncf %29 : vector<16x128xf32> to vector<16x128xbf16>
    %c0_20 = arith.constant 0 : index
    %c0_21 = arith.constant 0 : index
    %31 = vector.load %arg8[%c0_20, %c0_21] : memref<128x128xbf16, #tpu.memory_space<vmem>>, vector<128x128xbf16>
    %cst_22 = arith.constant dense<0.000000e+00> : vector<16x128xf32>
    %32 = tpu.matmul %30, %31, %cst_22 {dimension_numbers = #tpu.dot_dimension_numbers<[1], [0], [0], [1], [0, 0, 1, 1], [], []>} : vector<16x128xbf16>, vector<128x128xbf16>, vector<16x128xf32> -> vector<16x128xf32>
    %c0_23 = arith.constant 0 : index
    %c0_24 = arith.constant 0 : index
    %33 = vector.load %arg9[%c0_23, %c0_24] : memref<1x128xf32, #tpu.memory_space<vmem>>, vector<1x128xf32>
    %34 = vector.broadcast %33 : vector<1x128xf32> to vector<16x128xf32>
    %35 = arith.addf %32, %34 : vector<16x128xf32>
    %cst_25 = arith.constant 0.000000e+00 : f32
    %36 = vector.broadcast %cst_25 : f32 to vector<16x128xf32>
    %37 = arith.maximumf %35, %36 : vector<16x128xf32>
    %38 = arith.truncf %37 : vector<16x128xf32> to vector<16x128xbf16>
    %c0_26 = arith.constant 0 : index
    %c0_27 = arith.constant 0 : index
    %39 = vector.load %arg10[%c0_26, %c0_27] : memref<128x128xbf16, #tpu.memory_space<vmem>>, vector<128x128xbf16>
    %cst_28 = arith.constant dense<0.000000e+00> : vector<16x128xf32>
    %40 = tpu.matmul %38, %39, %cst_28 {dimension_numbers = #tpu.dot_dimension_numbers<[1], [0], [0], [1], [0, 0, 1, 1], [], []>} : vector<16x128xbf16>, vector<128x128xbf16>, vector<16x128xf32> -> vector<16x128xf32>
    %c0_29 = arith.constant 0 : index
    %c0_30 = arith.constant 0 : index
    %41 = vector.load %arg11[%c0_29, %c0_30] : memref<1x128xf32, #tpu.memory_space<vmem>>, vector<1x128xf32>
    %42 = vector.broadcast %41 : vector<1x128xf32> to vector<16x128xf32>
    %43 = arith.addf %40, %42 : vector<16x128xf32>
    %44 = arith.addf %43, %37 : vector<16x128xf32>
    %cst_31 = arith.constant 0.000000e+00 : f32
    %45 = vector.broadcast %cst_31 : f32 to vector<16x128xf32>
    %46 = arith.maximumf %44, %45 : vector<16x128xf32>
    %47 = arith.truncf %46 : vector<16x128xf32> to vector<16x128xbf16>
    %c0_32 = arith.constant 0 : index
    %c0_33 = arith.constant 0 : index
    %48 = vector.load %arg12[%c0_32, %c0_33] : memref<128x128xbf16, #tpu.memory_space<vmem>>, vector<128x128xbf16>
    %cst_34 = arith.constant dense<0.000000e+00> : vector<16x128xf32>
    %49 = tpu.matmul %47, %48, %cst_34 {dimension_numbers = #tpu.dot_dimension_numbers<[1], [0], [0], [1], [0, 0, 1, 1], [], []>} : vector<16x128xbf16>, vector<128x128xbf16>, vector<16x128xf32> -> vector<16x128xf32>
    %c0_35 = arith.constant 0 : index
    %c0_36 = arith.constant 0 : index
    %50 = vector.load %arg13[%c0_35, %c0_36] : memref<1x128xf32, #tpu.memory_space<vmem>>, vector<1x128xf32>
    %51 = vector.broadcast %50 : vector<1x128xf32> to vector<16x128xf32>
    %52 = arith.addf %49, %51 : vector<16x128xf32>
    %c0_37 = arith.constant 0 : index
    %c0_38 = arith.constant 0 : index
    %53 = vector.load %arg14[%c0_37, %c0_38] : memref<16x128xf32, #tpu.memory_space<vmem>>, vector<16x128xf32>
    tpu.vector_store %arg14[%c0_37, %c0_38], %52 {strides = array<i32>} : memref<16x128xf32, #tpu.memory_space<vmem>>, vector<16x128xf32>,
    return
  }
  func.func @transform_0(%arg0: i32) -> (i32, i32) {
    %c0_i32 = arith.constant 0 : i32
    %c0_i32_0 = arith.constant 0 : i32
    return %arg0, %c0_i32 : i32, i32
  }
  func.func @transform_1(%arg0: i32) -> (i32, i32) {
    %c0_i32 = arith.constant 0 : i32
    %c0_i32_0 = arith.constant 0 : i32
    %c0_i32_1 = arith.constant 0 : i32
    return %c0_i32, %c0_i32_0 : i32, i32
  }
  func.func @transform_2(%arg0: i32) -> (i32, i32) {
    %c0_i32 = arith.constant 0 : i32
    %c0_i32_0 = arith.constant 0 : i32
    %c0_i32_1 = arith.constant 0 : i32
    return %c0_i32, %c0_i32_0 : i32, i32
  }
  func.func @transform_3(%arg0: i32) -> (i32, i32) {
    %c0_i32 = arith.constant 0 : i32
    %c0_i32_0 = arith.constant 0 : i32
    %c0_i32_1 = arith.constant 0 : i32
    return %c0_i32, %c0_i32_0 : i32, i32
  }
  func.func @transform_4(%arg0: i32) -> (i32, i32) {
    %c0_i32 = arith.constant 0 : i32
    %c0_i32_0 = arith.constant 0 : i32
    %c0_i32_1 = arith.constant 0 : i32
    return %c0_i32, %c0_i32_0 : i32, i32
  }
  func.func @transform_5(%arg0: i32) -> (i32, i32) {
    %c0_i32 = arith.constant 0 : i32
    %c0_i32_0 = arith.constant 0 : i32
    %c0_i32_1 = arith.constant 0 : i32
    return %c0_i32, %c0_i32_0 : i32, i32
  }
  func.func @transform_6(%arg0: i32) -> (i32, i32) {
    %c0_i32 = arith.constant 0 : i32
    %c0_i32_0 = arith.constant 0 : i32
    %c0_i32_1 = arith.constant 0 : i32
    return %c0_i32, %c0_i32_0 : i32, i32
  }
  func.func @transform_7(%arg0: i32) -> (i32, i32) {
    %c0_i32 = arith.constant 0 : i32
    %c0_i32_0 = arith.constant 0 : i32
    %c0_i32_1 = arith.constant 0 : i32
    return %c0_i32, %c0_i32_0 : i32, i32
  }
  func.func @transform_8(%arg0: i32) -> (i32, i32) {
    %c0_i32 = arith.constant 0 : i32
    %c0_i32_0 = arith.constant 0 : i32
    %c0_i32_1 = arith.constant 0 : i32
    return %c0_i32, %c0_i32_0 : i32, i32
  }
  func.func @transform_9(%arg0: i32) -> (i32, i32) {
    %c0_i32 = arith.constant 0 : i32
    %c0_i32_0 = arith.constant 0 : i32
    %c0_i32_1 = arith.constant 0 : i32
    return %c0_i32, %c0_i32_0 : i32, i32
  }
  func.func @transform_10(%arg0: i32) -> (i32, i32) {
    %c0_i32 = arith.constant 0 : i32
    %c0_i32_0 = arith.constant 0 : i32
    %c0_i32_1 = arith.constant 0 : i32
    return %c0_i32, %c0_i32_0 : i32, i32
  }
  func.func @transform_11(%arg0: i32) -> (i32, i32) {
    %c0_i32 = arith.constant 0 : i32
    %c0_i32_0 = arith.constant 0 : i32
    %c0_i32_1 = arith.constant 0 : i32
    return %c0_i32, %c0_i32_0 : i32, i32
  }
  func.func @transform_12(%arg0: i32) -> (i32, i32) {
    %c0_i32 = arith.constant 0 : i32
    %c0_i32_0 = arith.constant 0 : i32
    %c0_i32_1 = arith.constant 0 : i32
    return %c0_i32, %c0_i32_0 : i32, i32
  }
  func.func @transform_13(%arg0: i32) -> (i32, i32) {
    %c0_i32 = arith.constant 0 : i32
    %c0_i32_0 = arith.constant 0 : i32
    return %arg0, %c0_i32 : i32, i32
  }
}

</mosaic_0001>

<bundles_post_ra>
// kernel: tpu_custom_call.1
= control target key start
LH: loop header
LB: loop body
LE: loop exit
PB: predicated region body
PF: predicated region fallthrough
CT: control target
= control target key end

     0   :  { %s2224_s0 = inlined_call_operand.hbm [shape: bf16[32,128], index: 0, kind: input, shape index: {}]   ;;  %s2225_s1 = inlined_call_operand.hbm [shape: bf16[128,128], index: 1, kind: input, shape index: {}]   ;;  %s2226_s2 = inlined_call_operand.vmem [shape: f32[1,128], index: 2, kind: input, shape index: {}]   ;;  %s2227_s3 = inlined_call_operand.hbm [shape: bf16[128,128], index: 3, kind: input, shape index: {}]   ;;  %s2228_s4 = inlined_call_operand.vmem [shape: f32[1,128], index: 4, kind: input, shape index: {}]   ;;  %s2229_s5 = inlined_call_operand.hbm [shape: bf16[128,128], index: 5, kind: input, shape index: {}]   ;;  %s2230_s6 = inlined_call_operand.vmem [shape: f32[1,128], index: 6, kind: input, shape index: {}]   ;;  %s2231_s7 = inlined_call_operand.hbm [shape: bf16[128,128], index: 7, kind: input, shape index: {}]   ;;  %s2232_s8 = inlined_call_operand.vmem [shape: f32[1,128], index: 8, kind: input, shape index: {}]   ;;  %s2233_s9 = inlined_call_operand.hbm [shape: bf16[128,128], index: 9, kind: input, shape index: {}]   ;;  %s2234_s10 = inlined_call_operand.vmem [shape: f32[1,128], index: 10, kind: input, shape index: {}]   ;;  %s2235_s11 = inlined_call_operand.hbm [shape: bf16[128,128], index: 11, kind: input, shape index: {}]   ;;  %s2236_s12 = inlined_call_operand.vmem [shape: f32[1,128], index: 12, kind: input, shape index: {}]   ;;  %s2237_s13 = inlined_call_operand.hbm [shape: f32[32,128], index: 13, kind: output, shape index: {}]  }
   0x1   :  { %2241 = sst [smem:[#allocation21_spill]] %s2225_s1 }
   0x2   :  { %2242 = sst [smem:[#allocation22_spill]] %s2227_s3 }
   0x3   :  { %2243 = sst [smem:[#allocation23_spill]] %s2229_s5 }
   0x4   :  { %2244 = sst [smem:[#allocation24_spill]] %s2231_s7 }
   0x5   :  { %2245 = sst [smem:[#allocation25_spill]] %s2233_s9 }
   0x6   :  { %2246 = sst [smem:[#allocation26_spill]] %s2235_s11 }
   0x7   :  { %2247 = sst [smem:[#allocation27_spill]] %s2237_s13 }
   0x8   :  { %18 = vsyncpa [#allocation3], 0 }
   0x9   :  { %20 = vsyncpa [#allocation3 + $0x1], 0 }
   0xa   :  { %21 = vsyncpa [#allocation6], 0 }
   0xb   :  { %22 = vsyncpa [#allocation9], 0 }
   0xc   :  { %23 = vsyncpa [#allocation12], 0 }
   0xd   :  { %24 = vsyncpa [#allocation4], 0 }
   0xe   :  { %26 = vsyncpa [#allocation4 + $0x1], 0  ;;  %s1999_s25 = smov 0   ;;  %s2001_s26 = smov 0  }
   0xf   :  { %s2003_s27 = smov 0   ;;  %s2005_s28 = smov 0  }
  0x10 LB: > { %s2248_s1 = sld [smem:[#allocation21_spill]]  ;;  %s2023_s15 = sadd.s32 4294967295, %s1916_s28   ;;  %s1916_s28 = sphi %s2005_s28, %s2270_s28   ;;  %s1912_s27 = sphi %s2003_s27, %s2269_s27   ;;  %s1908_s26 = sphi %s2001_s26, %s2268_s26   ;;  %s1904_s25 = sphi %s1999_s25, %s2267_s25  }
  0x11   : > { %p1236_p0 = scmp.ge.s32.totalorder %s1916_s28, 1  ;;  %p53_p1 = scmp.eq.s32.totalorder %s2023_s15, 0 }
  0x12   : > { %p341_p2 = scmp.lt.s32.totalorder %s1916_s28, 3  ;;  %s1918_s17 = smov [#allocation5]  }
  0x13   : > { %s354_s18 = sshll.u32 %s1918_s17, 4  ;;  %s2250_s5 = sld [smem:[#allocation23_spill]]  ;;  %s355_s18 = int_to_ptr.vmem [resolvable:$true] %s354_s18 }
  0x14   : > { %p2028_p3 = pnand %p1236_p0, %p341_p2  ;;  %s2252_s9 = sld [smem:[#allocation25_spill]] }
  0x15   : > { %s1919_s30 = smov [#allocation8]   ;;  %s2240_s13 = smov 4  }
  0x16   : > { %s352_s14 = sshll.u32 %s2248_s1, 4  ;;  %p1538_p4 = pneg %p2028_p3  ;;  %s353_s14 = int_to_ptr.hbm [resolvable:$true] %s352_s14 }
  0x17   : > { %s388_s17 = sshll.u32 %s1919_s30, 4  ;;  %s2239_s1 = smov 64   ;;  %s389_s17 = int_to_ptr.vmem [resolvable:$true] %s388_s17 }
  0x18   : > { %p2040_p6 = pnand %p1538_p4, %p53_p1  ;;  %s2253_s3 = sld [smem:[#allocation22_spill]] }
  0x19   : > { %s386_s21 = sshll.u32 %s2250_s5, 4  ;;  %s1922_s24 = smov [#allocation11]   ;;  %s387_s21 = int_to_ptr.hbm [resolvable:$true] %s386_s21 }
  0x1a   : > { %s420_s29 = sshll.u32 %s2252_s9, 4  ;;  %s422_s30 = sshll.u32 %s1922_s24, 4  ;;  %s421_s29 = int_to_ptr.hbm [resolvable:$true] %s420_s29  ;;  %s423_s30 = int_to_ptr.vmem [resolvable:$true] %s422_s30 }
  0x1b   : > { %1541 = dma.hbm_to_vmem [thread:$0]  (!%p2040_p6), %s353_s14, 1024, %s355_s18, [#allocation6], %s2239_s1, %s2239_s1, %s2240_s13  }
  0x1c   : > { %1547 = dma.hbm_to_vmem [thread:$0]  (!%p2040_p6), %s387_s21, 1024, %s389_s17, [#allocation9], %s2239_s1, %s2239_s1, %s2240_s13  }
  0x1d   : > { %1553 = dma.hbm_to_vmem [thread:$0]  (!%p2040_p6), %s421_s29, 1024, %s423_s30, [#allocation12], %s2239_s1, %s2239_s1, %s2240_s13  }
  0x1e   : > { %s369_s23 = sshll.u32 %s2253_s3, 4  ;;  %s1923_s14 = smov [#allocation7]   ;;  %s370_s23 = int_to_ptr.hbm [resolvable:$true] %s369_s23 }
  0x1f   : > { %s371_s18 = sshll.u32 %s1923_s14, 4  ;;  %s2254_s7 = sld [smem:[#allocation24_spill]]  ;;  %s372_s18 = int_to_ptr.vmem [resolvable:$true] %s371_s18 }
  0x20   : > { %1544 = dma.hbm_to_vmem [thread:$0]  (!%p2040_p6), %s370_s23, 1024, %s372_s18, [#allocation6], %s2239_s1, %s2239_s1, %s2240_s13  }
  0x21   : > { %s2255_s11 = sld [smem:[#allocation26_spill]]  ;;  %s1924_s24 = smov [#allocation10]  }
  0x22   : > { %s405_s5 = sshll.u32 %s1924_s24, 4  ;;  %s1925_s23 = smov [#allocation13]   ;;  %s406_s5 = int_to_ptr.vmem [resolvable:$true] %s405_s5 }
  0x23   : > { %s439_s30 = sshll.u32 %s1925_s23, 4  ;;  %s1235_s14 = sadd.s32 4294967294, %s1916_s28   ;;  %s440_s30 = int_to_ptr.vmem [resolvable:$true] %s439_s30 }
  0x24   : > { %s2088_s18 = sadd.s32 1, %s1916_s28   ;;  %s39_s19 = sadd.s32 1, %s1912_s27 }
  0x25   : > { %s403_s17 = sshll.u32 %s2254_s7, 4  ;;  %s36_s21 = ssub.s32 %s1916_s28, %s2088_s18  ;;  %s404_s17 = int_to_ptr.hbm [resolvable:$true] %s403_s17 }
  0x26   : > { %1550 = dma.hbm_to_vmem [thread:$0]  (!%p2040_p6), %s404_s17, 1024, %s406_s5, [#allocation9], %s2239_s1, %s2239_s1, %s2240_s13  }
  0x27   : > { %s437_s20 = sshll.u32 %s2255_s11, 4  ;;  %p37_p7 = scmp.eq.s32.totalorder %s36_s21, 0  ;;  %s438_s20 = int_to_ptr.hbm [resolvable:$true] %s437_s20 }
  0x28   : > { %1556 = dma.hbm_to_vmem [thread:$0]  (!%p2040_p6), %s438_s20, 1024, %s440_s30, [#allocation12], %s2239_s1, %s2239_s1, %s2240_s13  }
  0x29   : > { %p46_p8 = scmp.ne.s32.totalorder %s1912_s27, %s1908_s26  ;;  %p47_p9 = scmp.eq.s32.totalorder %s1916_s28, 0 }
  0x2a   : > { %p52_p10 = scmp.ne.s32.totalorder %s1908_s26, %s1904_s25  ;;  %p328_p13 = scmp.eq.s32.totalorder %s2023_s15, 1 }
  0x2b   : > { %s2099_s17 = scalar_select %p37_p7, %s1912_s27, %s39_s19  }
  0x2c   : > { %p2101_p11 = por %p47_p9, %p46_p8  ;;  %p2107_p12 = por %p53_p1, %p52_p10 }
  0x2d   : > { %2256 = sst [smem:[#allocation20_spill]] %s2099_s17  ;;  %p334_p0 = scmp.eq.s32.totalorder %s1235_s14, 1 }
  0x2e   : > { %p1571_p2 = scmp.lt.s32.totalorder %s1916_s28, 2  ;;  %s456_s20 = sand.u32 1, %s1912_s27  }
  0x2f   : > { %p2114_p4 = por %p328_p13, %p46_p8  ;;  %p2118_p6 = por %p334_p0, %p52_p10 }
  0x30   : > { %s1244_s23 = sshll.u32 %s456_s20, 3  ;;  %s1459_s30 = sshll.u32 %s1916_s28, 3 }
  0x31   : > { %s465_s1 = scalar_lea.hbm %s2224_s0, %s1459_s30  ;;  %s460_s13 = scalar_lea.vmem [#allocation2], %s1244_s23 }
  0x32   : > { %s468_s3 = sshll.u32 %s460_s13, 4  ;;  %s466_s7 = sshll.u32 %s465_s1, 4  ;;  %s469_s3 = int_to_ptr.vmem [resolvable:$true] %s468_s3  ;;  %s467_s7 = int_to_ptr.hbm [resolvable:$true] %s466_s7 }
  0x33   : > { %p2128_p7 = pnand %p1571_p2, %p2101_p11  ;;  %s457_s9 = scalar_lea.sflag [#allocation3], %s456_s20 }
  0x34   : > { %s1808_s11 = sshra.s32 %s467_s7, 4  ;;  %s1815_s1 = scalar_lea.hbm %s2224_s0, 16  ;;  %s1809_s11 = int_to_ptr.hbm [resolvable:$true] %s1808_s11 }
  0x35   : > { %s1810_s17 = scalar_lea.hbm %s1809_s11, 8  ;;  %p1812_p9 = pneg %p2128_p7 }
  0x36   : > { %p1811_p8 = scmp.ne.s32.totalorder %s1809_s11, %s1810_s17  ;;  %p1816_p11 = scmp.lt.s32.totalorder %s1809_s11, %s2224_s0 }
  0x37   : > { %p1817_p0 = scmp.lt.s32.totalorder %s1815_s1, %s1810_s17 }
  0x38   : > { %p1813_p10 = pnand %p1812_p9, %p1811_p8 }
  0x39   : > { %p1818_p2 = por %p1817_p0, %p1816_p11 }
  0x3a   : > { %p1814_p13 = pneg %p1813_p10 }
  0x3c   : > { %p1819_p5 = pnand %p1818_p2, %p1814_p13 }
  0x3e   : > { %1822 = shalt.err (!%p1819_p5)
}
  0x3f   : > { %s2262_s20 = smov 4   ;;  %s2263_s21 = smov 64  }
  0x40   : > { %1560 = dma.hbm_to_vmem [thread:$0]  (!%p2128_p7), %s467_s7, 128, %s469_s3, %s457_s9, %s2263_s21, %s2263_s21, %s2262_s20  }
  0x41   : > { %480 = sbr.rel (%p2028_p3) target bundleno = 965 (0x3c5), region = 72  ;;  %s2148_s19 = sand.u32 (!%p2028_p3), 1, %s1908_s26  }
  0x42   : > { %s1248_s11 = sshll.u32 (!%p2028_p3), %s2148_s19, 3  ;;  %s483_s17 = scalar_lea.sflag (!%p2028_p3), [#allocation3], %s2148_s19 }
  0x43   : > { %s2152_s23 = scalar_lea.vmem (!%p2028_p3), [#allocation2], %s1248_s11 }
  0x46   : > { %1883 = dma.done.wait (%p2107_p12), %s483_s17, 128  }
  0x47   : > { %1885 = vsyncadd (%p2107_p12), %s483_s17, 4294967168 }
  0x48   : > { %1887 = dma.done.wait (%p53_p1), [#allocation6], 2048  }
  0x49   : > { %1889 = vsyncadd (%p53_p1), [#allocation6], 4294965248 }
  0x4a   : > { %1891 = dma.done.wait (%p53_p1), [#allocation9], 2048  }
  0x4b   : > { %1893 = vsyncadd (%p53_p1), [#allocation9], 4294965248 }
  0x4c   : > { %1895 = dma.done.wait (%p53_p1), [#allocation12], 2048  }
  0x4d   : > { %1897 = vsyncadd (%p53_p1), [#allocation12], 4294965248  ;;  %v1468_v0 = vld [vmem:[#allocation5 + $0x38] sm:$0xff]  ;;  %v1467_v1 = vld [vmem:[#allocation5 + $0x30] sm:$0xff]  ;;  %s1255_s20 = sshll.u32 %s2148_s19, 4  ;;  %s1509_s17 = sshll.u32 %s2023_s15, 4 }
  0x4e   : > { %638 = vmatpush.bf16.msra.mxu0 %v1468_v0  ;;  %v1476_v2 = vld [vmem:[#allocation7 + $0x38] sm:$0xff]  ;;  %v1466_v3 = vld [vmem:[#allocation5 + $0x28] sm:$0xff]  ;;  %v1475_v4 = vld [vmem:[#allocation7 + $0x30] sm:$0xff]  ;;  %s2264_s7 = sld [smem:[#allocation27_spill]]  ;;  %s559_s16 = scalar_lea.vmem [#allocation14], %s1255_s20 }
  0x4f   : > { %727 = vmatpush.bf16.msra.mxu1 %v1476_v2  ;;  %v1474_v5 = vld [vmem:[#allocation7 + $0x28] sm:$0xff]  ;;  %v1465_v6 = vld [vmem:[#allocation5 + $0x20] sm:$0xff]  ;;  %v1464_v8 = vld [vmem:[#allocation5 + $0x18] sm:$0xff]  ;;  %s1102_s29 = sshll.u32 %s559_s16, 4  ;;  %s1090_s13 = scalar_lea.sflag [#allocation4], %s2148_s19  ;;  %s1103_s29 = int_to_ptr.vmem [resolvable:$true] %s1102_s29 }
  0x50   : > { %v1473_v7 = vld [vmem:[#allocation7 + $0x20] sm:$0xff]  ;;  %v1463_v9 = vld [vmem:[#allocation5 + $0x10] sm:$0xff]  ;;  %v1462_v10 = vld [vmem:[#allocation5 + $0x8] sm:$0xff] }
  0x51   : > { %v1461_v11 = vld [vmem:[#allocation5] sm:$0xff]  ;;  %v1460_v12 = vld [vmem:[%s2152_s23] sm:$0xff]  ;;  %v1470_v15 = vld [vmem:[#allocation7 + $0x8] sm:$0xff] }
  0x52   : > { %639 = vmatpush.bf16.msra.mxu0 %v1467_v1  ;;  %v1472_v13 = vld [vmem:[#allocation7 + $0x18] sm:$0xff]  ;;  %v1471_v14 = vld [vmem:[#allocation7 + $0x10] sm:$0xff]  ;;  %v1469_v16 = vld [vmem:[#allocation7] sm:$0xff]  ;;  %v1926_v1 = vmov 1.0|1.0  }
  0x53   : > { %728 = vmatpush.bf16.msra.mxu1 %v1475_v4  ;;  %v1484_v17 = vld [vmem:[#allocation8 + $0x38] sm:$0xff]  ;;  %v1483_v18 = vld [vmem:[#allocation8 + $0x30] sm:$0xff]  ;;  %v1482_v19 = vld [vmem:[#allocation8 + $0x28] sm:$0xff] }
  0x54   : > { %814 = vmatpush.bf16.msra.mxu2 %v1484_v17  ;;  %v1481_v20 = vld [vmem:[#allocation8 + $0x20] sm:$0xff]  ;;  %v1622_v22 = vld [vmem:[%s2226_s2] ss:$0 sm:$0xff]  ;;  %v1480_v34 = vld [vmem:[#allocation8 + $0x18] sm:$0xff]  ;;  %s1101_s9 = scalar_lea.hbm %s2264_s7, %s1509_s17  ;;  %s1858_s20 = scalar_lea.hbm %s2264_s7, 32 }
  0x55   : > { %v562_v23 = vld [vmem:[%s2152_s23] sm:$0xff]   ;;  %v1478_v36 = vld [vmem:[#allocation8 + $0x8] sm:$0xff]  ;;  %v1477_v37 = vld [vmem:[#allocation8] sm:$0xff]  ;;  %s1104_s14 = sshll.u32 %s1101_s9, 4  ;;  %s1105_s14 = int_to_ptr.hbm [resolvable:$true] %s1104_s14 }
  0x56   : > { %640 = vmatpush.bf16.msra.mxu0 %v1466_v3  ;;  %v652_v25 = vunpack.c.l.bf16 %v562_v23  ;;  %v653_v26 = vunpack.c.h.bf16 %v562_v23  ;;  %v1479_v35 = vld [vmem:[#allocation8 + $0x10] sm:$0xff]  ;;  %v1492_v38 = vld [vmem:[#allocation10 + $0x38] sm:$0xff]  ;;  %v1490_v40 = vld [vmem:[#allocation10 + $0x28] sm:$0xff]  ;;  %s1852_s1 = sshra.s32 %s1105_s14, 4  ;;  %s1853_s1 = int_to_ptr.hbm [resolvable:$true] %s1852_s1 }
  0x57   : > { %729 = vmatpush.bf16.msra.mxu1 %v1474_v5  ;;  %901 = vmatpush.bf16.msra.mxu3 %v1492_v38  ;;  %v1491_v39 = vld [vmem:[#allocation10 + $0x30] sm:$0xff]  ;;  %v1489_v41 = vld [vmem:[#allocation10 + $0x20] sm:$0xff]  ;;  %v1488_v42 = vld [vmem:[#allocation10 + $0x18] sm:$0xff]  ;;  %s1854_s15 = scalar_lea.hbm %s1853_s1, 16  ;;  %p1859_p12 = scmp.lt.s32.totalorder %s1853_s1, %s2264_s7 }
  0x58   : > { %815 = vmatpush.bf16.msra.mxu2 %v1483_v18  ;;  %v1623_v44 = vld [vmem:[%s2228_s4] ss:$0 sm:$0xff]  ;;  %v1486_v54 = vld [vmem:[#allocation10 + $0x8] sm:$0xff]  ;;  %v1485_v55 = vld [vmem:[#allocation10] sm:$0xff]  ;;  %p1855_p1 = scmp.ne.s32.totalorder %s1853_s1, %s1854_s15  ;;  %p1860_p7 = scmp.lt.s32.totalorder %s1858_s20, %s1854_s15 }
  0x59   : > { %v1487_v53 = vld [vmem:[#allocation10 + $0x10] sm:$0xff]  ;;  %v1500_v56 = vld [vmem:[#allocation11 + $0x38] sm:$0xff]  ;;  %v1498_v58 = vld [vmem:[#allocation11 + $0x28] sm:$0xff] }
  0x5a   : > { %641 = vmatpush.bf16.msra.mxu0 %v1465_v6  ;;  %v1499_v57 = vld [vmem:[#allocation11 + $0x30] sm:$0xff]  ;;  %v1497_v59 = vld [vmem:[#allocation11 + $0x20] sm:$0xff]  ;;  %v1496_v2 = vld [vmem:[#allocation11 + $0x18] sm:$0xff]  ;;  %p1856_p3 = pnand %p1855_p1, %p2114_p4  ;;  %p1861_p8 = por %p1860_p7, %p1859_p12 }
  0x5b   : > { %730 = vmatpush.bf16.msra.mxu1 %v1473_v7  ;;  %902 = vmatpush.bf16.msra.mxu3 %v1491_v39  ;;  %v1624_v61 = vld [vmem:[%s2230_s6] ss:$0 sm:$0xff]  ;;  %v1494_v4 = vld [vmem:[#allocation11 + $0x8] sm:$0xff]  ;;  %v1493_v5 = vld [vmem:[#allocation11] sm:$0xff] }
  0x5c   : > { %816 = vmatpush.bf16.msra.mxu2 %v1482_v19  ;;  %v1495_v3 = vld [vmem:[#allocation11 + $0x10] sm:$0xff]  ;;  %v1508_v6 = vld [vmem:[#allocation13 + $0x38] sm:$0xff]  ;;  %p1857_p5 = pneg %p1856_p3 }
  0x5d   : > { %v1507_v7 = vld [vmem:[#allocation13 + $0x30] sm:$0xff]  ;;  %v1504_v18 = vld [vmem:[#allocation13 + $0x18] sm:$0xff] }
  0x5e   : > { %642 = vmatpush.bf16.msra.mxu0 %v1464_v8  ;;  %v1506_v8 = vld [vmem:[#allocation13 + $0x28] sm:$0xff]  ;;  %v1503_v19 = vld [vmem:[#allocation13 + $0x10] sm:$0xff]  ;;  %p1862_p9 = pnand %p1861_p8, %p1857_p5 }
  0x5f   : > { %731 = vmatpush.bf16.msra.mxu1 %v1472_v13  ;;  %903 = vmatpush.bf16.msra.mxu3 %v1490_v40  ;;  %v1626_v23 = vld [vmem:[%s2234_s10] ss:$0 sm:$0xff] }
  0x60   : > { %817 = vmatpush.bf16.msra.mxu2 %v1481_v20  ;;  %v1502_v20 = vld [vmem:[#allocation13 + $0x8] sm:$0xff] }
  0x62   : > { %643 = vmatpush.bf16.msra.mxu0 %v1463_v9  ;;  %v1505_v9 = vld [vmem:[#allocation13 + $0x20] sm:$0xff] }
  0x63   : > { %732 = vmatpush.bf16.msra.mxu1 %v1471_v14  ;;  %904 = vmatpush.bf16.msra.mxu3 %v1489_v41 }
  0x64   : > { %818 = vmatpush.bf16.msra.mxu2 %v1480_v34 }
  0x66   : > { %644 = vmatpush.bf16.msra.mxu0 %v1462_v10 }
  0x67   : > { %733 = vmatpush.bf16.msra.mxu1 %v1470_v15  ;;  %905 = vmatpush.bf16.msra.mxu3 %v1488_v42 }
  0x68   : > { %819 = vmatpush.bf16.msra.mxu2 %v1479_v35 }
  0x6a   : > { %645 = vmatpush.bf16.msra.mxu0 %v1461_v11  ;;  %v1625_v11 = vld [vmem:[%s2232_s8] ss:$0 sm:$0xff] }
  0x6b   : > { %734 = vmatpush.bf16.msra.mxu1 %v1469_v16  ;;  %906 = vmatpush.bf16.msra.mxu3 %v1487_v53 }
  0x6c   : > { %820 = vmatpush.bf16.msra.mxu2 %v1478_v36 }
  0x6d   : > { %646 = vmatmul.bf16.vlgmr.msra.gmra.mxu0 %v1460_v12 }
  0x6e   : > { %986 = vmatpush.bf16.msrb.mxu0 %v1500_v56 }
  0x6f   : > { %907 = vmatpush.bf16.msra.mxu3 %v1486_v54  ;;  %1073 = vmatpush.bf16.msrb.mxu1 %v1508_v6 }
  0x70   : > { %821 = vmatpush.bf16.msra.mxu2 %v1477_v37 }
  0x72   : > { %987 = vmatpush.bf16.msrb.mxu0 %v1499_v57 }
  0x73   : > { %908 = vmatpush.bf16.msra.mxu3 %v1485_v55  ;;  %1074 = vmatpush.bf16.msrb.mxu1 %v1507_v7 }
  0x76   : > { %988 = vmatpush.bf16.msrb.mxu0 %v1498_v58 }
  0x77   : > { %1075 = vmatpush.bf16.msrb.mxu1 %v1506_v8 }
  0x7a   : > { %989 = vmatpush.bf16.msrb.mxu0 %v1497_v59 }
  0x7b   : > { %1076 = vmatpush.bf16.msrb.mxu1 %v1505_v9 }
  0x7e   : > { %990 = vmatpush.bf16.msrb.mxu0 %v1496_v2 }
  0x7f   : > { %1077 = vmatpush.bf16.msrb.mxu1 %v1504_v18 }
  0x82   : > { %991 = vmatpush.bf16.msrb.mxu0 %v1495_v3 }
  0x83   : > { %1078 = vmatpush.bf16.msrb.mxu1 %v1503_v19 }
  0x86   : > { %992 = vmatpush.bf16.msrb.mxu0 %v1494_v4 }
  0x87   : > { %1079 = vmatpush.bf16.msrb.mxu1 %v1502_v20 }
  0x8a   : > { %993 = vmatpush.bf16.msrb.mxu0 %v1493_v5 }
  0xea   : > { %v647_v21 = vpop.f32.mrf.mxu0 }
  0xeb   : > { %v648_v24 = vadd.f32 %v1622_v22, %v647_v21  ;;  %v1501_v21 = vld [vmem:[#allocation13] sm:$0xff] }
  0xec   : > { %1080 = vmatpush.bf16.msrb.mxu1 %v1501_v21 }
  0xed   : > { %v654_v28 = vadd.f32 %v652_v25, %v648_v24 }
  0xef   : > { %v656_v31 = vmax.f32 %v654_v28, 0.0 }
  0xf2   : > { %v649_v27 = vpop.f32.mrf.mxu0 }
  0xf3   : > { %v650_v29 = vadd.f32 %v1622_v22, %v649_v27 }
  0xf5   : > { %v655_v30 = vadd.f32 %v653_v26, %v650_v29 }
  0xf7   : > { %v657_v32 = vmax.f32 %v655_v30, 0.0 }
  0xf9   : > { %v658_v33 = vpack.c.bf16 %v657_v32, %v656_v31 }
  0xfb   : > { %735 = vmatmul.bf16.vlgmr.msra.gmra.mxu1 %v658_v33 }
 0x178   : > { %v736_v43 = vpop.f32.mrf.mxu1 }
 0x179   : > { %v737_v45 = vadd.f32 %v1623_v44, %v736_v43 }
 0x17b   : > { %v741_v47 = vadd.f32 %v737_v45, %v656_v31 }
 0x17d   : > { %v743_v50 = vmax.f32 %v741_v47, 0.0 }
 0x180   : > { %v738_v46 = vpop.f32.mrf.mxu1 }
 0x181   : > { %v739_v48 = vadd.f32 %v1623_v44, %v738_v46 }
 0x183   : > { %v742_v49 = vadd.f32 %v739_v48, %v657_v32  ;;  %v1627_v32 = vld [vmem:[%s2236_s12] ss:$0 sm:$0xff] }
 0x185   : > { %v744_v51 = vmax.f32 %v742_v49, 0.0 }
 0x187   : > { %v745_v52 = vpack.c.bf16 %v744_v51, %v743_v50 }
 0x189   : > { %822 = vmatmul.bf16.vlgmr.msra.gmra.mxu2 %v745_v52 }
 0x20c   : > { %v823_v60 = vpop.f32.mrf.mxu2 }
 0x20d   : > { %v824_v62 = vadd.f32 %v1624_v61, %v823_v60 }
 0x20f   : > { %vm828_vm0 = vcmp.gt.f32.partialorder %v824_v62, 0.0 }
 0x214   : > { %v825_v63 = vpop.f32.mrf.mxu2 }
 0x215   : > { %v826_v0 = vadd.f32 %v1624_v61, %v825_v63 }
 0x217   : > { %vm829_vm1 = vcmp.gt.f32.partialorder %v826_v0, 0.0 }
 0x218   : > { %vm1388_vm2 = vmpackc.low %vm829_vm1, %vm828_vm0 }
 0x219   : > { %1389 = vmatmul.msk.bf16.vlgmr.msra.gmra.mxu3 %vm1388_vm2, %v1926_v1 }
 0x29c   : > { %v910_v10 = vpop.f32.mrf.mxu3 }
 0x29d   : > { %v911_v12 = vadd.f32 %v1625_v11, %v910_v10 }
 0x29f   : > { %v915_v15 = vmax.f32 %v911_v12, 0.0 }
 0x2a4   : > { %v912_v13 = vpop.f32.mrf.mxu3 }
 0x2a5   : > { %v913_v14 = vadd.f32 %v1625_v11, %v912_v13 }
 0x2a7   : > { %v916_v16 = vmax.f32 %v913_v14, 0.0 }
 0x2a9   : > { %v917_v17 = vpack.c.bf16 %v916_v16, %v915_v15 }
 0x2ab   : > { %994 = vmatmul.bf16.vlgmr.msrb.gmra.mxu0 %v917_v17 }
 0x328   : > { %v995_v22 = vpop.f32.mrf.mxu0 }
 0x329   : > { %v996_v24 = vadd.f32 %v1626_v23, %v995_v22 }
 0x32b   : > { %v1000_v26 = vadd.f32 %v996_v24, %v915_v15 }
 0x32d   : > { %v1002_v29 = vmax.f32 %v1000_v26, 0.0 }
 0x330   : > { %v997_v25 = vpop.f32.mrf.mxu0 }
 0x331   : > { %v998_v27 = vadd.f32 %v1626_v23, %v997_v25 }
 0x333   : > { %v1001_v28 = vadd.f32 %v998_v27, %v916_v16 }
 0x335   : > { %v1003_v30 = vmax.f32 %v1001_v28, 0.0 }
 0x337   : > { %v1004_v31 = vpack.c.bf16 %v1003_v30, %v1002_v29 }
 0x339   : > { %1081 = vmatmul.bf16.vlgmr.msrb.gmra.mxu1 %v1004_v31 }
 0x3b6   : > { %v1082_v33 = vpop.f32.mrf.mxu1 }
 0x3b7   : > { %v1083_v34 = vadd.f32 %v1627_v32, %v1082_v33 }
 0x3b9   : > { %1087 = vst [vmem:[%s559_s16] sm:$0xff] %v1083_v34 }
 0x3be   : > { %v1084_v35 = vpop.f32.mrf.mxu1 }
 0x3bf   : > { %v1085_v36 = vadd.f32 %v1627_v32, %v1084_v35 }
 0x3c1   : > { %1088 = vst [vmem:[%s559_s16 + $0x8] sm:$0xff] %v1085_v36 }
 0x3c2   : > { %1865 = shalt.err (!%p1862_p9)
}
 0x3c3   : > { %s1927_s19 = smov 128   ;;  %s1928_s17 = smov 8  }
 0x3c4   : > { %1536 = dma.vmem_to_hbm [thread:$0]  (%p2114_p4), %s1103_s29, 256, %s1105_s14, %s1090_s13, %s1927_s19, %s1927_s19, %s1928_s17  }
 0x3c5 PF: > { %s1119_s23 = sand.u32 1, %s1904_s25   ;;  %p2265_p10 = scmp.ge.s32.totalorder %s1916_s28, 2 }
 0x3c6   : > { %s1120_s3 = scalar_lea.sflag [#allocation4], %s1119_s23 }
 0x3c7   : > { %p1562_p13 = pnand %p2265_p10, %p2118_p6 }
 0x3c9   : > { %p1563_p11 = pneg %p1562_p13 }
 0x3cb   : > { %1899 = dma.done.wait (%p1563_p11), %s1120_s3, 256  }
 0x3cc   : > { %1901 = vsyncadd (%p1563_p11), %s1120_s3, 4294967040  ;;  %s2266_s9 = sld [smem:[#allocation20_spill]]  ;;  %p29_p0 = scmp.ge.s32.totalorder %s2088_s18, 4  }
 0x3cd   : > { %s2267_s25 = smov %s1908_s26  ;;  %s2268_s26 = smov %s1912_s27 }
 0x3ce   : > { %s2270_s28 = smov %s2088_s18  ;;  %31 = sbr.rel (!%p29_p0) target bundleno = 16 (0x10), region = 141 }
 0x3d2   : > { %s2269_s27 = smov %s2266_s9 }
 0x3d3   :  { %1126 = vsyncpa [#allocation3], 1 }
 0x3d4   :  { %1128 = vsyncpa [#allocation3 + $0x1], 1 }
 0x3d5   :  { %1129 = vsyncpa [#allocation6], 1 }
 0x3d6   :  { %1130 = vsyncpa [#allocation9], 1 }
 0x3d7   :  { %1131 = vsyncpa [#allocation12], 1 }
 0x3d8   :  { %1132 = vsyncpa [#allocation4], 1 }
 0x3d9   :  { %1134 = vsyncpa [#allocation4 + $0x1], 1 }

</bundles_post_ra>
